<compile_context>
chip_gen: v7x
topology: tpu7x:2x2x1
jax: 0.10.0
libtpu: 0.0.40
codegen_flags: <defaults>
</compile_context>

<pallas_src>
import functools

import jax
import jax.numpy as jnp
from jax.experimental import pallas as pl
from jax.experimental.pallas import tpu as pltpu


def _round_up(x, m):
    return ((x + m - 1) // m) * m


def _device_vmem_bytes(default=64 << 20):
    """Physical VMEM per TensorCore; conservative fallback if query unavailable."""
    try:
        info = pltpu.get_tpu_info()
        return int(getattr(info, "vmem_capacity_bytes", default))
    except Exception:
        return default


def _swiglu_kernel(x_ref, w12_ref, w3_ref, o_ref, *, th):
    """Grid = (M tiles, H tiles).  H is the reduction axis; o_ref is the
    VMEM-resident f32 accumulator (its block index is constant across h)."""
    h = pl.program_id(1)

    @pl.when(h == 0)
    def _():
        o_ref[...] = jnp.zeros_like(o_ref)

    # In-kernel bf16 cast (VPU work hidden under the MXU) instead of an extra
    # wrapper-side HBM pass.
    x = x_ref[...].astype(jnp.bfloat16)                          # (TM, Dp)
    # One fused MXU dot for gate + up projections: (TM, 2*TH), f32 accumulation.
    h12 = jnp.dot(x, w12_ref[...], preferred_element_type=jnp.float32)
    h1 = h12[:, :th]                                             # x @ W1 tile
    h2 = h12[:, th:]                                             # x @ W2 tile
    swish = h1 * jax.nn.sigmoid(h1)                              # f32 (VPU + EUP)
    gated = (swish * h2).astype(w3_ref.dtype)                    # bf16 MXU operand
    o_ref[...] += jnp.dot(gated, w3_ref[...],
                          preferred_element_type=jnp.float32)    # (TM, Dp) f32


def pack_swiglu_weights(w1, w2, w3, *, tile_h=256):
    """One-time weight packing (do NOT call per forward pass).

    w1, w2: [D, H].  w3: [H, D].
    Returns (w12, w3p) where w12 is [Dp, 2*Hp] bf16 with the h-th lane block
    (width 2*th) laid out as [W1_blk_h | W2_blk_h], and w3p is [Hp, Dp] bf16.
    Zero padding is exact (padded rows/cols contribute 0).
    """
    assert tile_h % 128 == 0
    D, H = w1.shape
    th = min(tile_h, _round_up(H, 128))
    d_pad = _round_up(D, 128)
    h_pad = _round_up(H, th)

    w1p = jnp.pad(w1, ((0, d_pad - D), (0, h_pad - H))).astype(jnp.bfloat16)
    w2p = jnp.pad(w2, ((0, d_pad - D), (0, h_pad - H))).astype(jnp.bfloat16)
    w3p = jnp.pad(w3, ((0, h_pad - H), (0, d_pad - D))).astype(jnp.bfloat16)

    hn = h_pad // th
    w12 = jnp.stack(
        [w1p.reshape(d_pad, hn, th), w2p.reshape(d_pad, hn, th)], axis=2
    ).reshape(d_pad, 2 * h_pad)
    return w12, w3p


@functools.partial(jax.jit, static_argnames=("tile_m", "tile_h"))
def swiglu_pallas(x, w12, w3p, *, tile_m=512, tile_h=256):
    """x: [B, S, D] f32.  w12/w3p: pre-packed via pack_swiglu_weights with the
    SAME tile_h.  Returns [B, S, D] f32."""
    assert tile_m % 16 == 0 and tile_h % 128 == 0
    B, S, D = x.shape
    M = B * S
    d_pad, two_h_pad = w12.shape
    h_pad = two_h_pad // 2
    assert w3p.shape == (h_pad, d_pad)
    assert d_pad % 128 == 0 and d_pad >= D

    # Clamp tiles for tiny inputs; real workloads get the large defaults.
    tm = min(tile_m, _round_up(M, 16))
    th = min(tile_h, h_pad)
    assert h_pad % th == 0, "tile_h must match the tile_h used for packing"
    m_pad = _round_up(M, tm)

    # x stays f32 here (bf16 cast happens inside the kernel).  Padding is a
    # no-op for lane/tile-aligned real workloads.
    x2d = jnp.pad(x.reshape(M, D), ((0, m_pad - M), (0, d_pad - D)))

    grid = (m_pad // tm, h_pad // th)

    # VMEM budget: double-buffered blocks (x is f32 now) + headroom, capped at
    # the physical device VMEM (v7x = 64 MiB per TC).
    bf16, f32 = 2, 4
    vmem_need = (2 * tm * d_pad * f32            # x blocks (f32)
                 + 2 * d_pad * (2 * th) * bf16   # packed [W1|W2] blocks
                 + 2 * th * d_pad * bf16         # W3 blocks
                 + 2 * tm * d_pad * f32)         # resident f32 output block(s)
    vmem_cap = int(_device_vmem_bytes() * 0.9)
    vmem_limit = min(max(int(vmem_need * 1.3) + (4 << 20), 32 << 20), vmem_cap)

    out2d = pl.pallas_call(
        functools.partial(_swiglu_kernel, th=th),
        out_shape=jax.ShapeDtypeStruct((m_pad, d_pad), jnp.float32),
        grid_spec=pltpu.PrefetchScalarGridSpec(
            num_scalar_prefetch=0,
            grid=grid,
            in_specs=[
                pl.BlockSpec((tm, d_pad), lambda i, h: (i, 0)),      # x row tile
                pl.BlockSpec((d_pad, 2 * th), lambda i, h: (0, h)),  # [W1|W2] tile
                pl.BlockSpec((th, d_pad), lambda i, h: (h, 0)),      # W3 tile
            ],
            out_specs=pl.BlockSpec((tm, d_pad), lambda i, h: (i, 0)),
        ),
        compiler_params=pltpu.CompilerParams(
            dimension_semantics=("parallel", "arbitrary"),
            vmem_limit_bytes=vmem_limit,
        ),
    )(x2d, w12, w3p)

    return out2d[:M, :D].reshape(B, S, D)


def swiglu_reference(x, w1, w2, w3):
    h1 = x @ w1
    h2 = x @ w2
    return (h1 * jax.nn.sigmoid(h1) * h2) @ w3


if __name__ == "__main__":
    # Small shapes consistent with the module: block_size (seq)=8, embed=32.
    B, S, D = 2, 8, 32
    H = int(2 * (4 * D) / 3)  # = 85, matches SWiGLU.hidden_dims

    key = jax.random.PRNGKey(0)
    kx, k1, k2, k3 = jax.random.split(key, 4)

    x = jax.random.normal(kx, (B, S, D), dtype=jnp.float32)

    # nn.Linear(in, out, bias=False) weight is [out, in], init ~ U(-1/sqrt(in), 1/sqrt(in)).
    # Kernel consumes the transposed form [in, out].
    def linear_weight_T(k, in_f, out_f):
        bound = 1.0 / jnp.sqrt(jnp.float32(in_f))
        w = jax.random.uniform(k, (out_f, in_f), jnp.float32, -bound, bound)
        return w.T  # [in, out]

    w1 = linear_weight_T(k1, D, H)   # [D, H]
    w2 = linear_weight_T(k2, D, H)   # [D, H]
    w3 = linear_weight_T(k3, H, D)   # [H, D]

    # One-time packing (hoisted out of the per-call path).
    TILE_H = 256
    w12, w3p = pack_swiglu_weights(w1, w2, w3, tile_h=TILE_H)
    w12, w3p = jax.block_until_ready((w12, w3p))

    out = swiglu_pallas(x, w12, w3p, tile_m=512, tile_h=TILE_H)
    out = jax.block_until_ready(out)

    ref = swiglu_reference(x, w1, w2, w3)
    assert out.shape == (B, S, D)
    # bf16 matmul operands with f32 accumulation -> loosened tolerance vs f32 ref.
    assert jnp.allclose(out, ref, atol=2e-2, rtol=2e-2), "mismatch vs reference"

    print("KERNEL_OK")
</pallas_src>

<mosaic_0001>
module attributes {stable_mosaic.version = 11 : i64} {
  func.func @_swiglu_kernel(%arg0: i32, %arg1: i32, %arg2: memref<16x128xf32, #tpu.memory_space<vmem>>, %arg3: memref<128x256xbf16, #tpu.memory_space<vmem>>, %arg4: memref<128x128xbf16, #tpu.memory_space<vmem>>, %arg5: memref<16x128xf32, #tpu.memory_space<vmem>>) attributes {dimension_semantics = [#tpu.dimension_semantics<parallel>, #tpu.dimension_semantics<arbitrary>], iteration_bounds = array<i64: 1, 1>, scalar_prefetch = 0 : i64, scratch_operands = 0 : i64, tpu.core_type = #tpu.core_type<tc>, window_params = [{transform_indices = @transform_0, window_bounds = array<i64: 16, 128>}, {transform_indices = @transform_1, window_bounds = array<i64: 128, 256>}, {transform_indices = @transform_2, window_bounds = array<i64: 128, 128>}, {transform_indices = @transform_3, window_bounds = array<i64: 16, 128>}]} {
    %c0_i32 = arith.constant 0 : i32
    %0 = arith.cmpi eq, %arg1, %c0_i32 : i32
    %1 = arith.extui %0 : i1 to i32
    %c0_i32_0 = arith.constant 0 : i32
    %2 = arith.cmpi ne, %1, %c0_i32_0 : i32
    scf.if %2 {
      %cst_12 = arith.constant 0.000000e+00 : f32
      %22 = vector.broadcast %cst_12 : f32 to vector<16x128xf32>
      %c0_13 = arith.constant 0 : index
      %c0_14 = arith.constant 0 : index
      %23 = vector.load %arg5[%c0_13, %c0_14] : memref<16x128xf32, #tpu.memory_space<vmem>>, vector<16x128xf32>
      tpu.vector_store %arg5[%c0_13, %c0_14], %22 {strides = array<i32>} : memref<16x128xf32, #tpu.memory_space<vmem>>, vector<16x128xf32>,
    } else {
    }
    %c0 = arith.constant 0 : index
    %c0_1 = arith.constant 0 : index
    %3 = vector.load %arg2[%c0, %c0_1] : memref<16x128xf32, #tpu.memory_space<vmem>>, vector<16x128xf32>
    %4 = arith.truncf %3 : vector<16x128xf32> to vector<16x128xbf16>
    %c0_2 = arith.constant 0 : index
    %c0_3 = arith.constant 0 : index
    %5 = vector.load %arg3[%c0_2, %c0_3] : memref<128x256xbf16, #tpu.memory_space<vmem>>, vector<128x256xbf16>
    %cst = arith.constant dense<0.000000e+00> : vector<16x256xf32>
    %6 = tpu.matmul %4, %5, %cst {dimension_numbers = #tpu.dot_dimension_numbers<[1], [0], [0], [1], [0, 0, 1, 1], [], []>} : vector<16x128xbf16>, vector<128x256xbf16>, vector<16x256xf32> -> vector<16x256xf32>
    %7 = vector.extract_strided_slice %6 {offsets = [0, 0], sizes = [16, 128], strides = [1, 1]} : vector<16x256xf32> to vector<16x128xf32>
    %8 = vector.extract_strided_slice %6 {offsets = [0, 128], sizes = [16, 128], strides = [1, 1]} : vector<16x256xf32> to vector<16x128xf32>
    %9 = arith.negf %7 : vector<16x128xf32>
    %10 = math.exp %9 : vector<16x128xf32>
    %cst_4 = arith.constant 1.000000e+00 : f32
    %11 = vector.broadcast %cst_4 : f32 to vector<16x128xf32>
    %12 = arith.addf %11, %10 : vector<16x128xf32>
    %13 = arith.divf %11, %12 : vector<16x128xf32>
    %14 = arith.mulf %7, %13 : vector<16x128xf32>
    %15 = arith.mulf %14, %8 : vector<16x128xf32>
    %16 = arith.truncf %15 : vector<16x128xf32> to vector<16x128xbf16>
    %c0_5 = arith.constant 0 : index
    %c0_6 = arith.constant 0 : index
    %17 = vector.load %arg5[%c0_5, %c0_6] : memref<16x128xf32, #tpu.memory_space<vmem>>, vector<16x128xf32>
    %c0_7 = arith.constant 0 : index
    %c0_8 = arith.constant 0 : index
    %18 = vector.load %arg4[%c0_7, %c0_8] : memref<128x128xbf16, #tpu.memory_space<vmem>>, vector<128x128xbf16>
    %cst_9 = arith.constant dense<0.000000e+00> : vector<16x128xf32>
    %19 = tpu.matmul %16, %18, %cst_9 {dimension_numbers = #tpu.dot_dimension_numbers<[1], [0], [0], [1], [0, 0, 1, 1], [], []>} : vector<16x128xbf16>, vector<128x128xbf16>, vector<16x128xf32> -> vector<16x128xf32>
    %20 = arith.addf %17, %19 : vector<16x128xf32>
    %c0_10 = arith.constant 0 : index
    %c0_11 = arith.constant 0 : index
    %21 = vector.load %arg5[%c0_10, %c0_11] : memref<16x128xf32, #tpu.memory_space<vmem>>, vector<16x128xf32>
    tpu.vector_store %arg5[%c0_10, %c0_11], %20 {strides = array<i32>} : memref<16x128xf32, #tpu.memory_space<vmem>>, vector<16x128xf32>,
    return
  }
  func.func @transform_0(%arg0: i32, %arg1: i32) -> (i32, i32) {
    %c0_i32 = arith.constant 0 : i32
    %c0_i32_0 = arith.constant 0 : i32
    return %arg0, %c0_i32 : i32, i32
  }
  func.func @transform_1(%arg0: i32, %arg1: i32) -> (i32, i32) {
    %c0_i32 = arith.constant 0 : i32
    %c0_i32_0 = arith.constant 0 : i32
    return %c0_i32, %arg1 : i32, i32
  }
  func.func @transform_2(%arg0: i32, %arg1: i32) -> (i32, i32) {
    %c0_i32 = arith.constant 0 : i32
    %c0_i32_0 = arith.constant 0 : i32
    return %arg1, %c0_i32 : i32, i32
  }
  func.func @transform_3(%arg0: i32, %arg1: i32) -> (i32, i32) {
    %c0_i32 = arith.constant 0 : i32
    %c0_i32_0 = arith.constant 0 : i32
    return %arg0, %c0_i32 : i32, i32
  }
}

</mosaic_0001>

<bundles_post_ra>
// kernel: swiglu_pallas.1
= control target key start
LH: loop header
LB: loop body
LE: loop exit
PB: predicated region body
PF: predicated region fallthrough
CT: control target
= control target key end

     0   :  { %8 = vsyncpa [#allocation3], 0  ;;  %s542_s0 = inlined_call_operand.vmem [shape: f32[16,128], index: 0, kind: input, shape index: {}]   ;;  %s543_s1 = inlined_call_operand.hbm [shape: bf16[128,256], index: 1, kind: input, shape index: {}]   ;;  %s544_s2 = inlined_call_operand.hbm [shape: bf16[128,128], index: 2, kind: input, shape index: {}]   ;;  %s545_s3 = inlined_call_operand.vmem [shape: f32[16,128], index: 3, kind: output, shape index: {}]  }
   0x1   :  { %9 = vsyncpa [#allocation5], 0  ;;  %s477_s12 = smov [#allocation2]   ;;  %s429_s16 = scalar_lea.hbm %s543_s1, 2048 }
   0x2   :  { %s17_s13 = sshll.u32 %s477_s12, 4  ;;  %p430_p0 = scmp.ne.s32.totalorder %s543_s1, %s429_s16  ;;  %s18_s13 = int_to_ptr.vmem [resolvable:$true] %s17_s13 }
   0x3   :  { %p433_p1 = scmp.lt.u32.totalorder %s429_s16, %s543_s1 }
   0x5   :  { %p435_p2 = pnand %p433_p1, %p430_p0 }
   0x7   :  { %438 = shalt.err (!%p435_p2)
}
   0x8   :  { %s439_s21 = scalar_lea.vmem %s18_s13, 2048  ;;  %p444_p4 = scmp.lt.s32.totalorder %s18_s13, %s18_s13 }
   0x9   :  { %p440_p3 = scmp.ne.s32.totalorder %s18_s13, %s439_s21  ;;  %p445_p5 = scmp.lt.s32.totalorder %s439_s21, %s439_s21 }
   0xb   :  { %p446_p6 = por %p445_p5, %p444_p4 }
   0xd   :  { %p447_p7 = pnand %p446_p6, %p440_p3 }
   0xf   :  { %450 = shalt.err (!%p447_p7)
}
  0x10   :  { %s478_s22 = smov 128   ;;  %s479_s23 = smov 8  }
  0x11   :  { %23 = dma.hbm_to_vmem [thread:$0]  %s543_s1, 2048, %s18_s13, [#allocation3], %s478_s22, %s478_s22, %s479_s23  }
  0x12   :  { %s480_s26 = smov [#allocation4]   ;;  %s451_s30 = scalar_lea.hbm %s544_s2, 1024 }
  0x13   :  { %s29_s27 = sshll.u32 %s480_s26, 4  ;;  %p452_p8 = scmp.ne.s32.totalorder %s544_s2, %s451_s30  ;;  %s30_s27 = int_to_ptr.vmem [resolvable:$true] %s29_s27 }
  0x14   :  { %p455_p9 = scmp.lt.u32.totalorder %s451_s30, %s544_s2 }
  0x16   :  { %p457_p10 = pnand %p455_p9, %p452_p8 }
  0x18   :  { %460 = shalt.err (!%p457_p10)
}
  0x19   :  { %s461_s8 = scalar_lea.vmem %s30_s27, 1024  ;;  %p466_p12 = scmp.lt.s32.totalorder %s30_s27, %s30_s27 }
  0x1a   :  { %p462_p11 = scmp.ne.s32.totalorder %s30_s27, %s461_s8  ;;  %p467_p13 = scmp.lt.s32.totalorder %s461_s8, %s461_s8 }
  0x1c   :  { %p468_p0 = por %p467_p13, %p466_p12 }
  0x1e   :  { %p469_p1 = pnand %p468_p0, %p462_p11 }
  0x20   :  { %472 = shalt.err (!%p469_p1)
}
  0x21   :  { %s481_s1 = smov 64   ;;  %s482_s9 = smov 4  }
  0x22   :  { %35 = dma.hbm_to_vmem [thread:$0]  %s544_s2, 1024, %s30_s27, [#allocation5], %s481_s1, %s481_s1, %s482_s9  }
  0x23   :  { %473 = dma.done.wait [#allocation3], 2048  }
  0x24   :  { %474 = vsyncadd [#allocation3], 4294965248 }
  0x25   :  { %475 = dma.done.wait [#allocation5], 1024  }
  0x26   :  { %476 = vsyncadd [#allocation5], 4294966272  ;;  %v483_v0 = vmov 0   ;;  %v389_v1 = vld [vmem:[#allocation2 + $0x4] ss:$8 sps:$4 sm:$0xff]   ;;  %v484_v21 = vmov 0.0  }
  0x27   :  { %180 = vmatprep.mubr.bf16.mxu0 %v483_v0  ;;  %v391_v2 = vld [vmem:[#allocation2] ss:$8 sps:$4 sm:$0xff]   ;;  %148 = vmatprep.subr.bf16.mxu0 %v389_v1  ;;  %v392_v3 = vld [vmem:[#allocation2 + $0x14] ss:$8 sps:$4 sm:$0xff]   ;;  %v394_v4 = vld [vmem:[#allocation2 + $0x10] ss:$8 sps:$4 sm:$0xff]  }
  0x28   :  { %149 = vmatpush1.bf16.msra.mxu0 %v391_v2  ;;  %v395_v5 = vld [vmem:[#allocation2 + $0x24] ss:$8 sps:$4 sm:$0xff]   ;;  %v397_v6 = vld [vmem:[#allocation2 + $0x20] ss:$8 sps:$4 sm:$0xff]   ;;  %v398_v7 = vld [vmem:[#allocation2 + $0x34] ss:$8 sps:$4 sm:$0xff]   ;;  %360 = vmatprep.subr.bf16.mxu1 %v484_v21 }
  0x29   :  { %150 = vmatprep.subr.bf16.mxu0 %v392_v3  ;;  %v400_v8 = vld [vmem:[#allocation2 + $0x30] ss:$8 sps:$4 sm:$0xff]   ;;  %v401_v9 = vld [vmem:[#allocation2 + $0x44] ss:$8 sps:$4 sm:$0xff]   ;;  %v403_v10 = vld [vmem:[#allocation2 + $0x40] ss:$8 sps:$4 sm:$0xff]  }
  0x2a   :  { %v404_v11 = vld [vmem:[#allocation2 + $0x54] ss:$8 sps:$4 sm:$0xff]   ;;  %v406_v12 = vld [vmem:[#allocation2 + $0x50] ss:$8 sps:$4 sm:$0xff]   ;;  %v407_v13 = vld [vmem:[#allocation2 + $0x64] ss:$8 sps:$4 sm:$0xff]  }
  0x2b   :  { %v409_v14 = vld [vmem:[#allocation2 + $0x60] ss:$8 sps:$4 sm:$0xff]   ;;  %v410_v15 = vld [vmem:[#allocation2 + $0x74] ss:$8 sps:$4 sm:$0xff]   ;;  %v412_v16 = vld [vmem:[#allocation2 + $0x70] ss:$8 sps:$4 sm:$0xff]  }
  0x2c   :  { %151 = vmatpush1.bf16.msra.mxu0 %v394_v4  ;;  %v49_v17 = vld [vmem:[%s542_s0] sm:$0xff]  ;;  %v50_v18 = vld [vmem:[%s542_s0 + $0x8] sm:$0xff]  ;;  %v415_v23 = vld [vmem:[#allocation4 + $0x10] sm:$0xff]   ;;  %vm485_vm0 = vmmov 0  }
  0x2d   :  { %152 = vmatprep.subr.bf16.mxu0 %v395_v5  ;;  %v51_v19 = vpack.c.bf16 %v50_v18, %v49_v17  ;;  %v413_v20 = vld [vmem:[#allocation4] sm:$0xff]   ;;  %v414_v22 = vld [vmem:[#allocation4 + $0x8] sm:$0xff]   ;;  %v416_v24 = vld [vmem:[#allocation4 + $0x18] sm:$0xff]   ;;  %376 = vmatprep.mubr.msk.bf16.mxu1 %vm485_vm0, %v484_v21 }
  0x2e   :  { %361 = vmatpush3.bf16.msra.mxu1 %v413_v20  ;;  %v417_v25 = vld [vmem:[#allocation4 + $0x20] sm:$0xff]   ;;  %v418_v26 = vld [vmem:[#allocation4 + $0x28] sm:$0xff]   ;;  %v419_v27 = vld [vmem:[#allocation4 + $0x30] sm:$0xff]  }
  0x2f   :  { %362 = vmatprep.subr.bf16.mxu1 %v484_v21  ;;  %v420_v28 = vld [vmem:[#allocation4 + $0x38] sm:$0xff]  }
  0x30   :  { %153 = vmatpush1.bf16.msra.mxu0 %v397_v6 }
  0x31   :  { %154 = vmatprep.subr.bf16.mxu0 %v398_v7 }
  0x32   :  { %363 = vmatpush3.bf16.msra.mxu1 %v414_v22 }
  0x33   :  { %364 = vmatprep.subr.bf16.mxu1 %v484_v21 }
  0x34   :  { %155 = vmatpush1.bf16.msra.mxu0 %v400_v8 }
  0x35   :  { %156 = vmatprep.subr.bf16.mxu0 %v401_v9 }
  0x36   :  { %365 = vmatpush3.bf16.msra.mxu1 %v415_v23 }
  0x37   :  { %366 = vmatprep.subr.bf16.mxu1 %v484_v21 }
  0x38   :  { %157 = vmatpush1.bf16.msra.mxu0 %v403_v10 }
  0x39   :  { %158 = vmatprep.subr.bf16.mxu0 %v404_v11 }
  0x3a   :  { %367 = vmatpush3.bf16.msra.mxu1 %v416_v24 }
  0x3b   :  { %368 = vmatprep.subr.bf16.mxu1 %v484_v21 }
  0x3c   :  { %159 = vmatpush1.bf16.msra.mxu0 %v406_v12 }
  0x3d   :  { %160 = vmatprep.subr.bf16.mxu0 %v407_v13 }
  0x3e   :  { %369 = vmatpush3.bf16.msra.mxu1 %v417_v25 }
  0x3f   :  { %370 = vmatprep.subr.bf16.mxu1 %v484_v21 }
  0x40   :  { %161 = vmatpush1.bf16.msra.mxu0 %v409_v14 }
  0x41   :  { %162 = vmatprep.subr.bf16.mxu0 %v410_v15 }
  0x42   :  { %371 = vmatpush3.bf16.msra.mxu1 %v418_v26 }
  0x43   :  { %372 = vmatprep.subr.bf16.mxu1 %v484_v21 }
  0x44   :  { %163 = vmatpush1.bf16.msra.mxu0 %v412_v16 }
  0x46   :  { %373 = vmatpush3.bf16.msra.mxu1 %v419_v27 }
  0x47   :  { %181 = vmatmul.mubr.bf16.vlgmr.msra.gmra.mrb[0].mxu0 %v51_v19  ;;  %374 = vmatprep.subr.bf16.mxu1 %v484_v21 }
  0x4a   :  { %375 = vmatpush3.bf16.msra.mxu1 %v420_v28 }
 0x11a   :  { %v182_v29 = vpop.f32.mrb[0].mxu0 }
 0x11b   :  { %v341_v30 = vmul.f32 -1.442695, %v182_v29  ;;  %v184_v31 = vpop.f32.mrb[1].mxu0 }
 0x11c   :  { %v186_v32 = vpop.f32.mrb[2].mxu0 }
 0x11d   :  { %421 = vpow2.f32 %v341_v30  ;;  %v342_v33 = vmul.f32 -1.442695, %v186_v32  ;;  %v188_v34 = vpop.f32.mrb[3].mxu0 }
 0x11f   :  { %423 = vpow2.f32 %v342_v33 }
 0x127   :  { %v422_v35 = vpop.eup %421 }
 0x128   :  { %v197_v36 = vadd.f32 1.0, %v422_v35 }
 0x129   :  { %v424_v37 = vpop.eup %423 }
 0x12a   :  { %425 = vrcp.f32 %v197_v36  ;;  %v198_v38 = vadd.f32 1.0, %v424_v37 }
 0x12c   :  { %427 = vrcp.f32 %v198_v38 }
 0x134   :  { %v426_v39 = vpop.eup %425 }
 0x135   :  { %v203_v40 = vmul.f32 %v426_v39, %v182_v29 }
 0x136   :  { %v428_v41 = vpop.eup %427 }
 0x137   :  { %v205_v42 = vmul.f32 %v203_v40, %v184_v31  ;;  %v204_v43 = vmul.f32 %v428_v41, %v186_v32 }
 0x139   :  { %v206_v44 = vmul.f32 %v204_v43, %v188_v34 }
 0x13b   :  { %v207_v45 = vpack.c.bf16 %v206_v44, %v205_v42 }
 0x13d   :  { %377 = vmatmul.mubr.bf16.vlgmr.msra.gmra.mrb[0].mxu1 %v207_v45 }
 0x210   :  { %v308_v46 = vpop.f32.mrb[0].mxu1 }
 0x211   :  { %v378_v47 = vpop.f32.mrb[1].mxu1  ;;  %317 = vst [vmem:[%s545_s3] sm:$0xff] %v308_v46 }
 0x212   :  { %v311_v48 = vpop.f32.mrb[2].mxu1 }
 0x213   :  { %v379_v49 = vpop.f32.mrb[3].mxu1  ;;  %318 = vst [vmem:[%s545_s3 + $0x8] sm:$0xff] %v311_v48 }
 0x214   :  { %323 = vsyncpa [#allocation3], 1 }
 0x215   :  { %324 = vsyncpa [#allocation5], 1 }

</bundles_post_ra>
